<compile_context>
chip_gen: v6e
topology: v6e:2x2x1
jax: 0.10.0
libtpu: 0.0.40
codegen_flags: <defaults>
</compile_context>

<pallas_src>
import functools

import jax
import jax.numpy as jnp
from jax.experimental import pallas as pl
from jax.experimental.pallas import tpu as pltpu


def _round_up(v, m):
    return ((v + m - 1) // m) * m


def _sigmoid(v):
    # sigmoid(v) == 0.5*(tanh(v/2)+1): tanh runs on the EUP slot, mul/add on
    # the VPU -- avoids a long-latency f32 divide in the VALU.
    return 0.5 * (jnp.tanh(0.5 * v) + 1.0)


def mlp_kernel(params_ref, x_ref, y_ref, *, D, H, O):
    """Two fused Linear+sigmoid layers, batch on lanes.

    params_ref: flat f32[D*H + H + H*O + O] in SMEM
                (w0 row-major (D,H), b0 (H,), w3 row-major (H,O), b3 (O,)).
    x_ref:      (D, TM) f32 in VMEM  -- batch elements on lanes.
    y_ref:      (O, TM) f32 in VMEM.
    """
    x = x_ref[...]                              # (D, TM)

    w0_off = 0
    b0_off = D * H
    w3_off = b0_off + H
    b3_off = w3_off + H * O

    # Layer fc0: H broadcast multiply-adds over lane-dense (1, TM) vregs.
    hs = []
    for j in range(H):
        acc = x[0:1, :] * params_ref[w0_off + j]
        for i in range(1, D):
            acc = acc + x[i:i + 1, :] * params_ref[w0_off + i * H + j]
        hs.append(_sigmoid(acc + params_ref[b0_off + j]))

    # Layer fc3: O broadcast multiply-adds over the H hidden rows.
    for o in range(O):
        acc = hs[0] * params_ref[w3_off + o]
        for j in range(1, H):
            acc = acc + hs[j] * params_ref[w3_off + j * O + o]
        y_ref[o:o + 1, :] = _sigmoid(acc + params_ref[b3_off + o])


def pack_params(w0, b0, w3, b3):
    """Flatten the tiny parameter set once (row-major) for SMEM residence."""
    return jnp.concatenate([
        w0.astype(jnp.float32).reshape(-1),
        b0.astype(jnp.float32).reshape(-1),
        w3.astype(jnp.float32).reshape(-1),
        b3.astype(jnp.float32).reshape(-1),
    ])


def neuralnet_forward(x, params, *, in_features, hidden, out_features):
    """x: (N, D) f32; params: flat f32 vector; returns (N, out_features) f32."""
    D, H, O = in_features, hidden, out_features
    N = x.shape[0]

    # Batch-on-lanes tiling: lane dim must be a multiple of 128.  Whole batch
    # in one grid step when small; 2048-lane tiles otherwise (still tiny in
    # VMEM: (D+O)*2048*4B*2 buffers << 64 MiB v7x budget), and >=2 grid steps
    # for large N lets "parallel" shard rows across v7x's 2 TensorCores.
    if N <= 2048:
        TM = _round_up(max(N, 128), 128)
        Np = TM
    else:
        TM = 2048
        Np = _round_up(N, TM)

    # Only the lane (batch) dim is padded; feature dims stay un-padded (D, O).
    x_t = jnp.pad(x.astype(jnp.float32).T, ((0, 0), (0, Np - N)))  # (D, Np)

    n_params = D * H + H + H * O + O
    flops = Np * (2 * D * H + 2 * H * O + 2 * (H + O))
    transcendentals = Np * (H + O)
    bytes_accessed = 4 * (D * Np + O * Np + n_params)

    y_t = pl.pallas_call(
        functools.partial(mlp_kernel, D=D, H=H, O=O),
        out_shape=jax.ShapeDtypeStruct((O, Np), jnp.float32),
        grid=(Np // TM,),
        in_specs=[
            # All 9 weight/bias scalars live in SMEM, resident across the grid.
            pl.BlockSpec(memory_space=pltpu.MemorySpace.SMEM),
            # x: batch on lanes, tiled over the lane dim only.
            pl.BlockSpec((D, TM), lambda i: (0, i)),
        ],
        out_specs=pl.BlockSpec((O, TM), lambda i: (0, i)),
        compiler_params=pltpu.CompilerParams(
            dimension_semantics=("parallel",)),
        cost_estimate=pl.CostEstimate(
            flops=flops,
            transcendentals=transcendentals,
            bytes_accessed=bytes_accessed),
    )(params, x_t)

    # Drop lane padding (rows beyond N) and return batch-major (N, O).
    return y_t[:, :N].T


def make_neuralnet_forward(w0, b0, w3, b3):
    """Pack the parameters once and return a jitted forward(x) closure."""
    D, H = w0.shape
    O = w3.shape[1]
    params = pack_params(w0, b0, w3, b3)

    @jax.jit
    def forward(x):
        return neuralnet_forward(
            x, params, in_features=D, hidden=H, out_features=O)

    return forward


def reference_forward(x, w0, b0, w3, b3):
    h = jax.nn.sigmoid(x @ w0 + b0)
    return jax.nn.sigmoid(h @ w3 + b3)


# TODO(synk): do_training / cross_entropy loss / SGD+momentum / evaluate /
# predict are a training+eval loop with file I/O, not part of the forward
# pass; not translated to Pallas.

if __name__ == "__main__":
    key = jax.random.PRNGKey(0)
    k_x, k_w0, k_b0, k_w3, k_b3 = jax.random.split(key, 5)

    N, INPUT_DIM, HIDDEN, OUT = 8, 2, 2, 1   # NeuralNet(input_dim=2): 2->2->1

    x = jax.random.uniform(k_x, (N, INPUT_DIM), dtype=jnp.float32)
    # Parameters stored as (in_features, out_features), i.e. PyTorch weight.T.
    w0 = 0.5 * jax.random.normal(k_w0, (INPUT_DIM, HIDDEN), dtype=jnp.float32)
    b0 = 0.1 * jax.random.normal(k_b0, (HIDDEN,), dtype=jnp.float32)
    w3 = 0.5 * jax.random.normal(k_w3, (HIDDEN, OUT), dtype=jnp.float32)
    b3 = 0.1 * jax.random.normal(k_b3, (OUT,), dtype=jnp.float32)

    forward = make_neuralnet_forward(w0, b0, w3, b3)
    y = jax.block_until_ready(forward(x))

    y_ref = reference_forward(x, w0, b0, w3, b3)
    assert y.shape == (N, OUT), f"bad shape {y.shape}"
    assert jnp.allclose(y, y_ref, atol=1e-5, rtol=1e-5), (
        f"max abs err {float(jnp.max(jnp.abs(y - y_ref)))}")

    print("KERNEL_OK")
</pallas_src>

<mosaic_0001>
module attributes {stable_mosaic.version = 11 : i64} {
  func.func @mlp_kernel(%arg0: i32, %arg1: memref<9xf32, #tpu.memory_space<smem>>, %arg2: memref<2x128xf32, #tpu.memory_space<vmem>>, %arg3: memref<1x128xf32, #tpu.memory_space<vmem>>) attributes {dimension_semantics = [#tpu.dimension_semantics<parallel>], iteration_bounds = array<i64: 1>, scalar_prefetch = 0 : i64, scratch_operands = 0 : i64, tpu.core_type = #tpu.core_type<tc>, window_params = [{transform_indices = @transform_0, window_bounds = array<i64: 9>}, {transform_indices = @transform_1, window_bounds = array<i64: 2, 128>}, {transform_indices = @transform_2, window_bounds = array<i64: 1, 128>}]} {
    %c0 = arith.constant 0 : index
    %c0_0 = arith.constant 0 : index
    %0 = vector.load %arg2[%c0, %c0_0] : memref<2x128xf32, #tpu.memory_space<vmem>>, vector<2x128xf32>
    %1 = vector.extract_strided_slice %0 {offsets = [0, 0], sizes = [1, 128], strides = [1, 1]} : vector<2x128xf32> to vector<1x128xf32>
    %c0_1 = arith.constant 0 : index
    %2 = memref.load %arg1[%c0_1] : memref<9xf32, #tpu.memory_space<smem>>
    %3 = vector.broadcast %2 : f32 to vector<1x128xf32>
    %4 = arith.mulf %1, %3 : vector<1x128xf32>
    %5 = vector.extract_strided_slice %0 {offsets = [1, 0], sizes = [1, 128], strides = [1, 1]} : vector<2x128xf32> to vector<1x128xf32>
    %c2 = arith.constant 2 : index
    %6 = memref.load %arg1[%c2] : memref<9xf32, #tpu.memory_space<smem>>
    %7 = vector.broadcast %6 : f32 to vector<1x128xf32>
    %8 = arith.mulf %5, %7 : vector<1x128xf32>
    %9 = arith.addf %4, %8 : vector<1x128xf32>
    %c4 = arith.constant 4 : index
    %10 = memref.load %arg1[%c4] : memref<9xf32, #tpu.memory_space<smem>>
    %11 = vector.broadcast %10 : f32 to vector<1x128xf32>
    %12 = arith.addf %9, %11 : vector<1x128xf32>
    %cst = arith.constant 5.000000e-01 : f32
    %13 = vector.broadcast %cst : f32 to vector<1x128xf32>
    %14 = arith.mulf %13, %12 : vector<1x128xf32>
    %15 = math.tanh %14 : vector<1x128xf32>
    %cst_2 = arith.constant 1.000000e+00 : f32
    %16 = vector.broadcast %cst_2 : f32 to vector<1x128xf32>
    %17 = arith.addf %15, %16 : vector<1x128xf32>
    %cst_3 = arith.constant 5.000000e-01 : f32
    %18 = vector.broadcast %cst_3 : f32 to vector<1x128xf32>
    %19 = arith.mulf %18, %17 : vector<1x128xf32>
    %20 = vector.extract_strided_slice %0 {offsets = [0, 0], sizes = [1, 128], strides = [1, 1]} : vector<2x128xf32> to vector<1x128xf32>
    %c1 = arith.constant 1 : index
    %21 = memref.load %arg1[%c1] : memref<9xf32, #tpu.memory_space<smem>>
    %22 = vector.broadcast %21 : f32 to vector<1x128xf32>
    %23 = arith.mulf %20, %22 : vector<1x128xf32>
    %24 = vector.extract_strided_slice %0 {offsets = [1, 0], sizes = [1, 128], strides = [1, 1]} : vector<2x128xf32> to vector<1x128xf32>
    %c3 = arith.constant 3 : index
    %25 = memref.load %arg1[%c3] : memref<9xf32, #tpu.memory_space<smem>>
    %26 = vector.broadcast %25 : f32 to vector<1x128xf32>
    %27 = arith.mulf %24, %26 : vector<1x128xf32>
    %28 = arith.addf %23, %27 : vector<1x128xf32>
    %c5 = arith.constant 5 : index
    %29 = memref.load %arg1[%c5] : memref<9xf32, #tpu.memory_space<smem>>
    %30 = vector.broadcast %29 : f32 to vector<1x128xf32>
    %31 = arith.addf %28, %30 : vector<1x128xf32>
    %cst_4 = arith.constant 5.000000e-01 : f32
    %32 = vector.broadcast %cst_4 : f32 to vector<1x128xf32>
    %33 = arith.mulf %32, %31 : vector<1x128xf32>
    %34 = math.tanh %33 : vector<1x128xf32>
    %cst_5 = arith.constant 1.000000e+00 : f32
    %35 = vector.broadcast %cst_5 : f32 to vector<1x128xf32>
    %36 = arith.addf %34, %35 : vector<1x128xf32>
    %cst_6 = arith.constant 5.000000e-01 : f32
    %37 = vector.broadcast %cst_6 : f32 to vector<1x128xf32>
    %38 = arith.mulf %37, %36 : vector<1x128xf32>
    %c6 = arith.constant 6 : index
    %39 = memref.load %arg1[%c6] : memref<9xf32, #tpu.memory_space<smem>>
    %40 = vector.broadcast %39 : f32 to vector<1x128xf32>
    %41 = arith.mulf %19, %40 : vector<1x128xf32>
    %c7 = arith.constant 7 : index
    %42 = memref.load %arg1[%c7] : memref<9xf32, #tpu.memory_space<smem>>
    %43 = vector.broadcast %42 : f32 to vector<1x128xf32>
    %44 = arith.mulf %38, %43 : vector<1x128xf32>
    %45 = arith.addf %41, %44 : vector<1x128xf32>
    %c8 = arith.constant 8 : index
    %46 = memref.load %arg1[%c8] : memref<9xf32, #tpu.memory_space<smem>>
    %47 = vector.broadcast %46 : f32 to vector<1x128xf32>
    %48 = arith.addf %45, %47 : vector<1x128xf32>
    %cst_7 = arith.constant 5.000000e-01 : f32
    %49 = vector.broadcast %cst_7 : f32 to vector<1x128xf32>
    %50 = arith.mulf %49, %48 : vector<1x128xf32>
    %51 = math.tanh %50 : vector<1x128xf32>
    %cst_8 = arith.constant 1.000000e+00 : f32
    %52 = vector.broadcast %cst_8 : f32 to vector<1x128xf32>
    %53 = arith.addf %51, %52 : vector<1x128xf32>
    %cst_9 = arith.constant 5.000000e-01 : f32
    %54 = vector.broadcast %cst_9 : f32 to vector<1x128xf32>
    %55 = arith.mulf %54, %53 : vector<1x128xf32>
    %c0_10 = arith.constant 0 : index
    %c0_11 = arith.constant 0 : index
    %56 = vector.load %arg3[%c0_10, %c0_11] : memref<1x128xf32, #tpu.memory_space<vmem>>, vector<1x128xf32>
    tpu.vector_store %arg3[%c0_10, %c0_11], %55 {strides = array<i32>} : memref<1x128xf32, #tpu.memory_space<vmem>>, vector<1x128xf32>,
    return
  }
  func.func @transform_0(%arg0: i32) -> i32 {
    %c0_i32 = arith.constant 0 : i32
    %c0_i32_0 = arith.constant 0 : i32
    return %c0_i32 : i32
  }
  func.func @transform_1(%arg0: i32) -> (i32, i32) {
    %c0_i32 = arith.constant 0 : i32
    %c0_i32_0 = arith.constant 0 : i32
    return %c0_i32, %arg0 : i32, i32
  }
  func.func @transform_2(%arg0: i32) -> (i32, i32) {
    %c0_i32 = arith.constant 0 : i32
    %c0_i32_0 = arith.constant 0 : i32
    return %c0_i32, %arg0 : i32, i32
  }
}

</mosaic_0001>

<bundles_post_ra>
// kernel: forward.1
= control target key start
LH: loop header
LB: loop body
LE: loop exit
PB: predicated region body
PF: predicated region fallthrough
CT: control target
= control target key end

     0   :  { %7 = vsyncpa [#allocation3], 0  ;;  %s133_s0 = inlined_call_operand.vmem [shape: f32[9], index: 0, kind: input, shape index: {}]   ;;  %s134_s1 = inlined_call_operand.vmem [shape: f32[2,128], index: 1, kind: input, shape index: {}]   ;;  %s135_s2 = inlined_call_operand.vmem [shape: f32[1,128], index: 2, kind: output, shape index: {}]  }
   0x1   :  { %s14_s11 = sshll.u32 %s133_s0, 4  ;;  %s15_s11 = int_to_ptr.vmem [resolvable:$true] %s14_s11 }
   0x2   :  { %s94_s12 = scalar_lea.vmem %s15_s11, 16  ;;  %p99_p1 = scmp.lt.s32.totalorder %s15_s11, %s15_s11 }
   0x3   :  { %p95_p0 = scmp.ne.s32.totalorder %s15_s11, %s94_s12  ;;  %p100_p2 = scmp.lt.s32.totalorder %s94_s12, %s94_s12 }
   0x5   :  { %p101_p3 = por %p100_p2, %p99_p1 }
   0x7   :  { %p102_p4 = pnand %p101_p3, %p95_p0 }
   0x9   :  { %105 = shalt.err (!%p102_p4)
}
   0xa   :  { %s108_s13 = smov [#allocation2]  }
   0xb   :  { %17 = dma.vmem_to_smem %s15_s11, 16, %s108_s13, [#allocation3]  }
   0xc   :  { %106 = dma.done.wait [#allocation3], 16  }
   0xd   :  { %107 = vsyncadd [#allocation3], 4294967280 }
   0xe   :  { %23 = sfence }
   0xf   :  { %s25_s14 = sld [smem:[#allocation2]]  ;;  %v24_v0 = vld [vmem:[%s134_s1] sm:$0x3] }
  0x10   :  { %s79_s15 = sld [smem:[#allocation2 + $0x2]] }
  0x11   :  { %s80_s16 = sld [smem:[#allocation2 + $0x4]] }
  0x12   :  { %s81_s17 = sld [smem:[#allocation2 + $0x1]] }
  0x13   :  { %s82_s18 = sld [smem:[#allocation2 + $0x3]] }
  0x14   :  { %s83_s20 = sld [smem:[#allocation2 + $0x5]] }
  0x15   :  { %v26_v1 = vstv %s25_s14  ;;  %s84_s1 = sld [smem:[#allocation2 + $0x6]] }
  0x16   :  { %v29_v2 = vstv %s79_s15  ;;  %v27_v3 = vmul.f32 %v26_v1, %v24_v0  ;;  %s85_s21 = sld [smem:[#allocation2 + $0x7]] }
  0x17   :  { %v30_v4 = vmul.f32 %v29_v2, %v24_v0  ;;  %v36_v8 = vstv %s80_s16  ;;  %s86_s22 = sld [smem:[#allocation2 + $0x8]] }
  0x18   :  { %v43_v5 = vstv %s81_s17 }
  0x19   :  { %v32_v6 = vrot.slane %v30_v4, 1  ;;  %v46_v7 = vstv %s82_s18  ;;  %v44_v9 = vmul.f32 %v43_v5, %v24_v0 }
  0x1a   :  { %v47_v10 = vmul.f32 %v46_v7, %v24_v0  ;;  %v53_v14 = vstv %s83_s20 }
  0x1b   :  { %v34_v11 = vadd.f32 %v32_v6, %v27_v3  ;;  %v60_v23 = vstv %s84_s1 }
  0x1c   :  { %v49_v12 = vrot.slane %v47_v10, 1  ;;  %v63_v25 = vstv %s85_s21 }
  0x1d   :  { %v37_v13 = vadd.f32 %v36_v8, %v34_v11  ;;  %v67_v29 = vstv %s86_s22 }
  0x1e   :  { %v51_v15 = vadd.f32 %v49_v12, %v44_v9 }
  0x1f   :  { %v38_v16 = vmul.f32 0.5, %v37_v13 }
  0x20   :  { %v54_v17 = vadd.f32 %v53_v14, %v51_v15 }
  0x21   :  { %88 = vtanh.f32 %v38_v16 }
  0x22   :  { %v55_v18 = vmul.f32 0.5, %v54_v17 }
  0x24   :  { %90 = vtanh.f32 %v55_v18 }
  0x2e   :  { %v89_v19 = vpop.eup %88 }
  0x2f   :  { %v40_v20 = vadd.f32 1.0, %v89_v19 }
  0x31   :  { %v91_v21 = vpop.eup %90  ;;  %v41_v22 = vmul.f32 0.5, %v40_v20 }
  0x32   :  { %v57_v24 = vadd.f32 1.0, %v91_v21 }
  0x33   :  { %v61_v27 = vmul.f32 %v60_v23, %v41_v22 }
  0x34   :  { %v58_v26 = vmul.f32 0.5, %v57_v24 }
  0x36   :  { %v64_v28 = vmul.f32 %v63_v25, %v58_v26 }
  0x38   :  { %v65_v30 = vadd.f32 %v64_v28, %v61_v27 }
  0x3a   :  { %v68_v31 = vadd.f32 %v67_v29, %v65_v30 }
  0x3c   :  { %v69_v32 = vmul.f32 0.5, %v68_v31 }
  0x3e   :  { %92 = vtanh.f32 %v69_v32 }
  0x4b   :  { %v93_v33 = vpop.eup %92 }
  0x4c   :  { %v71_v34 = vadd.f32 1.0, %v93_v33 }
  0x4e   :  { %v72_v35 = vmul.f32 0.5, %v71_v34 }
  0x50   :  { %73 = vst [vmem:[%s135_s2] sm:$0x1] %v72_v35 }
  0x51   :  { %78 = vsyncpa [#allocation3], 1 }

</bundles_post_ra>
